<compile_context>
chip_gen: v5e
topology: v5e:2x2
jax: 0.10.0
libtpu: 0.0.40
codegen_flags: <defaults>
</compile_context>

<pallas_src>
import functools

import jax
import jax.numpy as jnp
from jax.experimental import pallas as pl
from jax.experimental.pallas import tpu as pltpu

_LANE = 128


def _round_up(x, m):
    return (x + m - 1) // m * m


def _pad2d(x, rows, cols):
    r, c = x.shape
    return jnp.pad(x, ((0, rows - r), (0, cols - c)))


def _fused_gcn_kernel(a_ref, x_ref, w1_ref, b1_ref, w2_ref, b2_ref,
                      o_ref, h_ref, *, l1_agg_first, l2_agg_first):
    """out = A @ relu(A @ X @ W1 + b1) @ W2 + b2, all operands VMEM-resident."""

    def layer(a, feat, w_ref, b_ref, agg_first):
        if agg_first:
            # (A @ X) @ W  -- N^2 matmul carries C_in lanes
            t = jnp.dot(a, feat, preferred_element_type=jnp.float32)
            y = jnp.dot(t.astype(jnp.bfloat16), w_ref[...],
                        preferred_element_type=jnp.float32)
        else:
            # A @ (X @ W)  -- N^2 matmul carries C_out lanes
            t = jnp.dot(feat, w_ref[...], preferred_element_type=jnp.float32)
            y = jnp.dot(a, t.astype(jnp.bfloat16),
                        preferred_element_type=jnp.float32)
        return y + b_ref[...]  # bias broadcast over nodes (f32)

    a = a_ref[...]  # bf16 [N_pad, N_pad], loaded once, reused by both layers

    # Layer 1 + ReLU; hidden activation kept in bf16 VMEM scratch.
    h = layer(a, x_ref[...], w1_ref, b1_ref, l1_agg_first)
    h_ref[...] = jnp.maximum(h, 0.0).astype(h_ref.dtype)

    # Layer 2 (no activation).
    y = layer(a, h_ref[...], w2_ref, b2_ref, l2_agg_first)
    o_ref[...] = y.astype(o_ref.dtype)


def build_normalized_adjacency(edge_index, num_nodes):
    """Dense D^{-1/2} (A + I_remaining) D^{-1/2}, GCNConv conventions.

    edge_index: int32 [2, E]; message j -> i means A[i, j] += 1 (scatter-add, so
    duplicate edges accumulate). Self-loops are added only for nodes that do not
    already have one (add_remaining_self_loops semantics). Glue scatter is plain JAX.
    """
    src, dst = edge_index[0], edge_index[1]
    a = jnp.zeros((num_nodes, num_nodes), dtype=jnp.float32)
    a = a.at[dst, src].add(1.0)
    diag = jnp.diagonal(a)
    a = a + jnp.diag(jnp.where(diag > 0.0, 0.0, 1.0))
    deg = jnp.sum(a, axis=1)
    dinv_sqrt = jnp.where(deg > 0.0, jax.lax.rsqrt(deg), 0.0)
    return dinv_sqrt[:, None] * a * dinv_sqrt[None, :]


def gcn_model_forward(x, edge_index, params):
    n, c_in = x.shape
    hidden = params["w1"].shape[1]
    c_out = params["w2"].shape[1]

    a_hat = build_normalized_adjacency(edge_index, n)

    # Lane-dense padding (multiples of 128 on every matmul dim); zero padding is
    # exact: padded rows/cols contribute 0 and are sliced off at the end.
    n_pad = _round_up(n, _LANE)
    ci_pad = _round_up(c_in, _LANE)
    hd_pad = _round_up(hidden, _LANE)
    co_pad = _round_up(c_out, _LANE)

    a_p = _pad2d(a_hat, n_pad, n_pad).astype(jnp.bfloat16)
    x_p = _pad2d(x.astype(jnp.float32), n_pad, ci_pad).astype(jnp.bfloat16)
    w1_p = _pad2d(params["w1"], ci_pad, hd_pad).astype(jnp.bfloat16)
    w2_p = _pad2d(params["w2"], hd_pad, co_pad).astype(jnp.bfloat16)
    b1_p = _pad2d(params["b1"].reshape(1, -1), 1, hd_pad).astype(jnp.float32)
    b2_p = _pad2d(params["b2"].reshape(1, -1), 1, co_pad).astype(jnp.float32)

    kernel = functools.partial(
        _fused_gcn_kernel,
        l1_agg_first=(c_in <= hidden),   # 8 -> 32: (A@X)@W1
        l2_agg_first=(hidden <= c_out),  # 32 -> 4: A@(H@W2)
    )

    # Scoped-VMEM budget sized from the actual resident footprint (with headroom),
    # clamped well below physical VMEM on every generation (incl. v7x's 64 MiB).
    footprint = (
        a_p.size * 2 + x_p.size * 2 + w1_p.size * 2 + w2_p.size * 2
        + b1_p.size * 4 + b2_p.size * 4
        + n_pad * co_pad * 4          # f32 output
        + n_pad * hd_pad * 2          # bf16 hidden scratch
    )
    vmem_limit = int(min(max(4 * footprint, 4 << 20), 32 << 20))

    out_p = pl.pallas_call(
        kernel,
        out_shape=jax.ShapeDtypeStruct((n_pad, co_pad), jnp.float32),
        in_specs=[
            pl.BlockSpec(memory_space=pltpu.VMEM),  # A_hat [N_pad, N_pad] bf16
            pl.BlockSpec(memory_space=pltpu.VMEM),  # X     [N_pad, Ci_pad] bf16
            pl.BlockSpec(memory_space=pltpu.VMEM),  # W1    [Ci_pad, H_pad] bf16
            pl.BlockSpec(memory_space=pltpu.VMEM),  # b1    [1, H_pad] f32
            pl.BlockSpec(memory_space=pltpu.VMEM),  # W2    [H_pad, Co_pad] bf16
            pl.BlockSpec(memory_space=pltpu.VMEM),  # b2    [1, Co_pad] f32
        ],
        out_specs=pl.BlockSpec(memory_space=pltpu.VMEM),
        scratch_shapes=[pltpu.VMEM((n_pad, hd_pad), jnp.bfloat16)],  # hidden h
        compiler_params=pltpu.CompilerParams(vmem_limit_bytes=vmem_limit),
    )(a_p, x_p, w1_p, b1_p, w2_p, b2_p)

    return out_p[:n, :c_out]


def init_params(key, in_channels, hidden_channels, out_channels):
    k1, k2 = jax.random.split(key)
    # Glorot-style init for weights (as GCNConv), zero biases.
    s1 = jnp.sqrt(6.0 / (in_channels + hidden_channels))
    s2 = jnp.sqrt(6.0 / (hidden_channels + out_channels))
    return {
        "w1": jax.random.uniform(
            k1, (in_channels, hidden_channels), jnp.float32, -s1, s1),
        "b1": jnp.zeros((1, hidden_channels), jnp.float32),
        "w2": jax.random.uniform(
            k2, (hidden_channels, out_channels), jnp.float32, -s2, s2),
        "b2": jnp.zeros((1, out_channels), jnp.float32),
    }


def _reference_forward(x, edge_index, params):
    """Pure-JAX f32 reference for correctness checking."""
    a_hat = build_normalized_adjacency(edge_index, x.shape[0])
    h = jnp.maximum(a_hat @ (x @ params["w1"]) + params["b1"], 0.0)
    return a_hat @ (h @ params["w2"]) + params["b2"]


if __name__ == "__main__":
    key = jax.random.PRNGKey(0)
    k_x, k_p = jax.random.split(key)

    num_nodes = 16
    in_channels = 8
    hidden_channels = 32
    out_channels = 4

    # Node feature matrix [N, C_in]
    x = jax.random.normal(k_x, (num_nodes, in_channels), dtype=jnp.float32)

    # Deterministic bidirectional ring graph, edge_index [2, E]
    src = jnp.arange(num_nodes, dtype=jnp.int32)
    dst = (src + 1) % num_nodes
    edge_index = jnp.concatenate(
        [jnp.stack([src, dst], axis=0), jnp.stack([dst, src], axis=0)], axis=1
    )

    params = init_params(k_p, in_channels, hidden_channels, out_channels)

    out = gcn_model_forward(x, edge_index, params)
    jax.block_until_ready(out)
    assert out.shape == (num_nodes, out_channels)

    ref = _reference_forward(x, edge_index, params)
    assert bool(jnp.all(jnp.isfinite(out)))
    assert bool(jnp.allclose(out, ref, atol=5e-2, rtol=5e-2)), "mismatch vs f32 reference"

    print("KERNEL_OK")
</pallas_src>

<mosaic_0001>
module attributes {stable_mosaic.version = 11 : i64} {
  func.func @_fused_gcn_kernel(%arg0: memref<128x128xbf16, #tpu.memory_space<vmem>>, %arg1: memref<128x128xbf16, #tpu.memory_space<vmem>>, %arg2: memref<128x128xbf16, #tpu.memory_space<vmem>>, %arg3: memref<1x128xf32, #tpu.memory_space<vmem>>, %arg4: memref<128x128xbf16, #tpu.memory_space<vmem>>, %arg5: memref<1x128xf32, #tpu.memory_space<vmem>>, %arg6: memref<128x128xf32, #tpu.memory_space<vmem>>, %arg7: memref<128x128xbf16, #tpu.memory_space<vmem>>) attributes {dimension_semantics = [], scalar_prefetch = 0 : i64, scratch_operands = 1 : i64, tpu.core_type = #tpu.core_type<tc>} {
    %c0 = arith.constant 0 : index
    %c0_0 = arith.constant 0 : index
    %0 = vector.load %arg0[%c0, %c0_0] : memref<128x128xbf16, #tpu.memory_space<vmem>>, vector<128x128xbf16>
    %c0_1 = arith.constant 0 : index
    %c0_2 = arith.constant 0 : index
    %1 = vector.load %arg1[%c0_1, %c0_2] : memref<128x128xbf16, #tpu.memory_space<vmem>>, vector<128x128xbf16>
    %cst = arith.constant dense<0.000000e+00> : vector<128x128xf32>
    %2 = tpu.matmul %0, %1, %cst {dimension_numbers = #tpu.dot_dimension_numbers<[1], [0], [0], [1], [0, 0, 1, 1], [], []>} : vector<128x128xbf16>, vector<128x128xbf16>, vector<128x128xf32> -> vector<128x128xf32>
    %3 = arith.truncf %2 : vector<128x128xf32> to vector<128x128xbf16>
    %c0_3 = arith.constant 0 : index
    %c0_4 = arith.constant 0 : index
    %4 = vector.load %arg2[%c0_3, %c0_4] : memref<128x128xbf16, #tpu.memory_space<vmem>>, vector<128x128xbf16>
    %cst_5 = arith.constant dense<0.000000e+00> : vector<128x128xf32>
    %5 = tpu.matmul %3, %4, %cst_5 {dimension_numbers = #tpu.dot_dimension_numbers<[1], [0], [0], [1], [0, 0, 1, 1], [], []>} : vector<128x128xbf16>, vector<128x128xbf16>, vector<128x128xf32> -> vector<128x128xf32>
    %c0_6 = arith.constant 0 : index
    %c0_7 = arith.constant 0 : index
    %6 = vector.load %arg3[%c0_6, %c0_7] : memref<1x128xf32, #tpu.memory_space<vmem>>, vector<1x128xf32>
    %7 = vector.broadcast %6 : vector<1x128xf32> to vector<128x128xf32>
    %8 = arith.addf %5, %7 : vector<128x128xf32>
    %cst_8 = arith.constant 0.000000e+00 : f32
    %9 = vector.broadcast %cst_8 : f32 to vector<128x128xf32>
    %10 = arith.maximumf %8, %9 : vector<128x128xf32>
    %11 = arith.truncf %10 : vector<128x128xf32> to vector<128x128xbf16>
    %c0_9 = arith.constant 0 : index
    %c0_10 = arith.constant 0 : index
    %12 = vector.load %arg7[%c0_9, %c0_10] : memref<128x128xbf16, #tpu.memory_space<vmem>>, vector<128x128xbf16>
    tpu.vector_store %arg7[%c0_9, %c0_10], %11 {strides = array<i32>} : memref<128x128xbf16, #tpu.memory_space<vmem>>, vector<128x128xbf16>,
    %c0_11 = arith.constant 0 : index
    %c0_12 = arith.constant 0 : index
    %13 = vector.load %arg7[%c0_11, %c0_12] : memref<128x128xbf16, #tpu.memory_space<vmem>>, vector<128x128xbf16>
    %c0_13 = arith.constant 0 : index
    %c0_14 = arith.constant 0 : index
    %14 = vector.load %arg4[%c0_13, %c0_14] : memref<128x128xbf16, #tpu.memory_space<vmem>>, vector<128x128xbf16>
    %cst_15 = arith.constant dense<0.000000e+00> : vector<128x128xf32>
    %15 = tpu.matmul %13, %14, %cst_15 {dimension_numbers = #tpu.dot_dimension_numbers<[1], [0], [0], [1], [0, 0, 1, 1], [], []>} : vector<128x128xbf16>, vector<128x128xbf16>, vector<128x128xf32> -> vector<128x128xf32>
    %16 = arith.truncf %15 : vector<128x128xf32> to vector<128x128xbf16>
    %cst_16 = arith.constant dense<0.000000e+00> : vector<128x128xf32>
    %17 = tpu.matmul %0, %16, %cst_16 {dimension_numbers = #tpu.dot_dimension_numbers<[1], [0], [0], [1], [0, 0, 1, 1], [], []>} : vector<128x128xbf16>, vector<128x128xbf16>, vector<128x128xf32> -> vector<128x128xf32>
    %c0_17 = arith.constant 0 : index
    %c0_18 = arith.constant 0 : index
    %18 = vector.load %arg5[%c0_17, %c0_18] : memref<1x128xf32, #tpu.memory_space<vmem>>, vector<1x128xf32>
    %19 = vector.broadcast %18 : vector<1x128xf32> to vector<128x128xf32>
    %20 = arith.addf %17, %19 : vector<128x128xf32>
    %c0_19 = arith.constant 0 : index
    %c0_20 = arith.constant 0 : index
    %21 = vector.load %arg6[%c0_19, %c0_20] : memref<128x128xf32, #tpu.memory_space<vmem>>, vector<128x128xf32>
    tpu.vector_store %arg6[%c0_19, %c0_20], %20 {strides = array<i32>} : memref<128x128xf32, #tpu.memory_space<vmem>>, vector<128x128xf32>,
    return
  }
}

</mosaic_0001>

<bundles_post_ra>
// kernel: tpu_custom_call.1
= control target key start
LH: loop header
LB: loop body
LE: loop exit
PB: predicated region body
PF: predicated region fallthrough
CT: control target
= control target key end

     0   :  { %11 = vsyncpa [#allocation4], 0  ;;  %s1213_s0 = inlined_call_operand.hbm [shape: bf16[128,128], index: 0, kind: input, shape index: {}]   ;;  %s1214_s1 = inlined_call_operand.hbm [shape: bf16[128,128], index: 1, kind: input, shape index: {}]   ;;  %s1215_s2 = inlined_call_operand.hbm [shape: bf16[128,128], index: 2, kind: input, shape index: {}]   ;;  %s1216_s3 = inlined_call_operand.vmem [shape: f32[1,128], index: 3, kind: input, shape index: {}]   ;;  %s1217_s4 = inlined_call_operand.hbm [shape: bf16[128,128], index: 4, kind: input, shape index: {}]   ;;  %s1218_s5 = inlined_call_operand.vmem [shape: f32[1,128], index: 5, kind: input, shape index: {}]   ;;  %s1219_s6 = inlined_call_operand.hbm [shape: f32[128,128], index: 6, kind: output, shape index: {}]  }
   0x1   :  { %12 = vsyncpa [#allocation7], 0 }
   0x2   :  { %13 = vsyncpa [#allocation10], 0 }
   0x3   :  { %14 = vsyncpa [#allocation5], 0  ;;  %s32_s23 = sshll.u32 %s1214_s1, 4  ;;  %s1098_s24 = smov [#allocation6]   ;;  %s33_s23 = int_to_ptr.hbm [resolvable:$true] %s32_s23 }
   0x4   :  { %s34_s25 = sshll.u32 %s1098_s24, 4  ;;  %s19_s28 = sshll.u32 %s1213_s0, 4  ;;  %s35_s25 = int_to_ptr.vmem [resolvable:$true] %s34_s25  ;;  %s20_s28 = int_to_ptr.hbm [resolvable:$true] %s19_s28 }
   0x5   :  { %s1099_s29 = smov 64   ;;  %s1100_s30 = smov 4  }
   0x6   :  { %40 = dma.hbm_to_vmem [thread:$0]  %s33_s23, 1024, %s35_s25, [#allocation7], %s1099_s29, %s1099_s29, %s1100_s30  }
   0x7   :  { %s1101_s7 = smov [#allocation3]   ;;  %s45_s11 = sshll.u32 %s1215_s2, 4  ;;  %s46_s11 = int_to_ptr.hbm [resolvable:$true] %s45_s11 }
   0x8   :  { %s21_s8 = sshll.u32 %s1101_s7, 4  ;;  %s60_s13 = sshll.u32 %s1217_s4, 4  ;;  %s22_s8 = int_to_ptr.vmem [resolvable:$true] %s21_s8  ;;  %s61_s13 = int_to_ptr.hbm [resolvable:$true] %s60_s13 }
   0x9   :  { %27 = dma.hbm_to_vmem [thread:$0]  %s20_s28, 1024, %s22_s8, [#allocation4], %s1099_s29, %s1099_s29, %s1100_s30  }
   0xa   :  { %s1102_s14 = smov [#allocation8]   ;;  %s1103_s0 = smov [#allocation9]  }
   0xb   :  { %s47_s15 = sshll.u32 %s1102_s14, 4  ;;  %s62_s16 = sshll.u32 %s1103_s0, 4  ;;  %s48_s15 = int_to_ptr.vmem [resolvable:$true] %s47_s15  ;;  %s63_s16 = int_to_ptr.vmem [resolvable:$true] %s62_s16 }
   0xc   :  { %53 = dma.hbm_to_vmem [thread:$0]  %s46_s11, 1024, %s48_s15, [#allocation7], %s1099_s29, %s1099_s29, %s1100_s30  }
   0xd   :  { %68 = dma.hbm_to_vmem [thread:$0]  %s61_s13, 1024, %s63_s16, [#allocation10], %s1099_s29, %s1099_s29, %s1100_s30  }
   0xe   :  { %1090 = dma.done.wait [#allocation4], 1024  }
   0xf   :  { %1091 = vsyncadd [#allocation4], 4294966272 }
  0x10   :  { %1092 = dma.done.wait [#allocation7], 2048  }
  0x11   :  { %1093 = vsyncadd [#allocation7], 4294965248 }
  0x12   :  { %1094 = dma.done.wait [#allocation10], 1024  }
  0x13   :  { %1095 = vsyncadd [#allocation10], 4294966272  ;;  %v887_v0 = vld [vmem:[#allocation6 + $0x38] sm:$0xff]  ;;  %v886_v1 = vld [vmem:[#allocation6 + $0x30] sm:$0xff]  ;;  %s697_s21 = sshll.u32 %s1219_s6, 4  ;;  %s1105_s22 = smov 128   ;;  %s698_s21 = int_to_ptr.hbm [resolvable:$true] %s697_s21 }
  0x14   :  { %215 = vmatpush.bf16.msra.mxu0 %v887_v0  ;;  %v885_v2 = vld [vmem:[#allocation6 + $0x28] sm:$0xff]  ;;  %v884_v3 = vld [vmem:[#allocation6 + $0x20] sm:$0xff]  ;;  %v883_v4 = vld [vmem:[#allocation6 + $0x18] sm:$0xff]  ;;  %s1106_s23 = smov 8  }
  0x15   :  { %v882_v5 = vld [vmem:[#allocation6 + $0x10] sm:$0xff]  ;;  %v881_v6 = vld [vmem:[#allocation6 + $0x8] sm:$0xff]  ;;  %v880_v7 = vld [vmem:[#allocation6] sm:$0xff] }
  0x16   :  { %v1154_v8 = vld [vmem:[#allocation3] sm:$0xff]  ;;  %v1157_v9 = vld [vmem:[#allocation3 + $0x8] sm:$0xff]  ;;  %v1160_v10 = vld [vmem:[#allocation3 + $0x10] sm:$0xff] }
  0x17   :  { %v1163_v11 = vld [vmem:[#allocation3 + $0x18] sm:$0xff]  ;;  %v1166_v12 = vld [vmem:[#allocation3 + $0x20] sm:$0xff]  ;;  %v894_v14 = vld [vmem:[#allocation8 + $0x30] sm:$0xff] }
  0x18   :  { %216 = vmatpush.bf16.msra.mxu0 %v886_v1  ;;  %v895_v13 = vld [vmem:[#allocation8 + $0x38] sm:$0xff]  ;;  %v1169_v15 = vld [vmem:[#allocation3 + $0x28] sm:$0xff]  ;;  %v892_v17 = vld [vmem:[#allocation8 + $0x20] sm:$0xff] }
  0x19   :  { %340 = vmatpush.bf16.msra.mxu1 %v895_v13  ;;  %v893_v16 = vld [vmem:[#allocation8 + $0x28] sm:$0xff]  ;;  %v891_v18 = vld [vmem:[#allocation8 + $0x18] sm:$0xff]  ;;  %v890_v19 = vld [vmem:[#allocation8 + $0x10] sm:$0xff] }
  0x1a   :  { %v1172_v20 = vld [vmem:[#allocation3 + $0x30] sm:$0xff]  ;;  %v889_v21 = vld [vmem:[#allocation8 + $0x8] sm:$0xff]  ;;  %v888_v22 = vld [vmem:[#allocation8] sm:$0xff] }
  0x1b   :  { %v1175_v23 = vld [vmem:[#allocation3 + $0x38] sm:$0xff]  ;;  %v910_v43 = vld [vmem:[#allocation9 + $0x30] sm:$0xff]  ;;  %v909_v45 = vld [vmem:[#allocation9 + $0x28] sm:$0xff] }
  0x1c   :  { %217 = vmatpush.bf16.msra.mxu0 %v885_v2  ;;  %v911_v42 = vld [vmem:[#allocation9 + $0x38] sm:$0xff]  ;;  %v908_v48 = vld [vmem:[#allocation9 + $0x20] sm:$0xff]  ;;  %v906_v51 = vld [vmem:[#allocation9 + $0x10] sm:$0xff] }
  0x1d   :  { %341 = vmatpush.bf16.msra.mxu1 %v894_v14  ;;  %565 = vmatpush.bf16.msra.mxu2 %v911_v42  ;;  %v907_v49 = vld [vmem:[#allocation9 + $0x18] sm:$0xff]  ;;  %v905_v52 = vld [vmem:[#allocation9 + $0x8] sm:$0xff]  ;;  %v904_v55 = vld [vmem:[#allocation9] sm:$0xff] }
  0x1e   :  { %v1181_v57 = vld [vmem:[%s1216_s3] ss:$0 sm:$0xff] }
  0x20   :  { %218 = vmatpush.bf16.msra.mxu0 %v884_v3 }
  0x21   :  { %342 = vmatpush.bf16.msra.mxu1 %v893_v16  ;;  %566 = vmatpush.bf16.msra.mxu2 %v910_v43 }
  0x24   :  { %219 = vmatpush.bf16.msra.mxu0 %v883_v4 }
  0x25   :  { %343 = vmatpush.bf16.msra.mxu1 %v892_v17  ;;  %567 = vmatpush.bf16.msra.mxu2 %v909_v45 }
  0x28   :  { %220 = vmatpush.bf16.msra.mxu0 %v882_v5 }
  0x29   :  { %344 = vmatpush.bf16.msra.mxu1 %v891_v18  ;;  %568 = vmatpush.bf16.msra.mxu2 %v908_v48 }
  0x2c   :  { %221 = vmatpush.bf16.msra.mxu0 %v881_v6 }
  0x2d   :  { %345 = vmatpush.bf16.msra.mxu1 %v890_v19  ;;  %569 = vmatpush.bf16.msra.mxu2 %v907_v49 }
  0x30   :  { %222 = vmatpush.bf16.msra.mxu0 %v880_v7 }
  0x31   :  { %346 = vmatpush.bf16.msra.mxu1 %v889_v21  ;;  %570 = vmatpush.bf16.msra.mxu2 %v906_v51 }
  0x33   :  { %223 = vmatmul.bf16.vlgmr.msra.gmra.mxu0 %v1154_v8 }
  0x35   :  { %347 = vmatpush.bf16.msra.mxu1 %v888_v22  ;;  %571 = vmatpush.bf16.msra.mxu2 %v905_v52 }
  0x39   :  { %572 = vmatpush.bf16.msra.mxu2 %v904_v55 }
  0x43   :  { %228 = vmatmul.bf16.gmra.mxu0 %v1157_v9 }
  0x53   :  { %233 = vmatmul.bf16.gmra.mxu0 %v1160_v10 }
  0x63   :  { %238 = vmatmul.bf16.gmra.mxu0 %v1163_v11 }
  0x73   :  { %243 = vmatmul.bf16.gmra.mxu0 %v1166_v12 }
  0x83   :  { %248 = vmatmul.bf16.gmra.mxu0 %v1169_v15 }
  0x93   :  { %253 = vmatmul.bf16.gmra.mxu0 %v1172_v20 }
  0xa3   :  { %258 = vmatmul.bf16.gmra.mxu0 %v1175_v23 }
  0xb0   :  { %v224_v24 = vpop.f32.mrf.mxu0 }
  0xb8   :  { %v226_v25 = vpop.f32.mrf.mxu0 }
  0xb9   :  { %v264_v26 = vpack.c.bf16 %v226_v25, %v224_v24 }
  0xbb   :  { %348 = vmatmul.bf16.vlgmr.msra.gmra.mxu1 %v264_v26 }
  0xc0   :  { %v229_v27 = vpop.f32.mrf.mxu0 }
  0xc8   :  { %v231_v28 = vpop.f32.mrf.mxu0 }
  0xc9   :  { %v265_v29 = vpack.c.bf16 %v231_v28, %v229_v27 }
  0xcb   :  { %353 = vmatmul.bf16.gmra.mxu1 %v265_v29 }
  0xd0   :  { %v234_v30 = vpop.f32.mrf.mxu0 }
  0xd8   :  { %v236_v31 = vpop.f32.mrf.mxu0 }
  0xd9   :  { %v266_v32 = vpack.c.bf16 %v236_v31, %v234_v30 }
  0xdb   :  { %358 = vmatmul.bf16.gmra.mxu1 %v266_v32 }
  0xe0   :  { %v239_v33 = vpop.f32.mrf.mxu0 }
  0xe8   :  { %v241_v34 = vpop.f32.mrf.mxu0 }
  0xe9   :  { %v267_v35 = vpack.c.bf16 %v241_v34, %v239_v33 }
  0xeb   :  { %363 = vmatmul.bf16.gmra.mxu1 %v267_v35 }
  0xf0   :  { %v244_v36 = vpop.f32.mrf.mxu0 }
  0xf8   :  { %v246_v37 = vpop.f32.mrf.mxu0 }
  0xf9   :  { %v268_v38 = vpack.c.bf16 %v246_v37, %v244_v36 }
  0xfb   :  { %368 = vmatmul.bf16.gmra.mxu1 %v268_v38 }
 0x100   :  { %v249_v39 = vpop.f32.mrf.mxu0 }
 0x108   :  { %v251_v40 = vpop.f32.mrf.mxu0 }
 0x109   :  { %v269_v41 = vpack.c.bf16 %v251_v40, %v249_v39 }
 0x10b   :  { %373 = vmatmul.bf16.gmra.mxu1 %v269_v41 }
 0x110   :  { %v254_v44 = vpop.f32.mrf.mxu0 }
 0x118   :  { %v256_v46 = vpop.f32.mrf.mxu0 }
 0x119   :  { %v270_v47 = vpack.c.bf16 %v256_v46, %v254_v44 }
 0x11b   :  { %378 = vmatmul.bf16.gmra.mxu1 %v270_v47 }
 0x120   :  { %v259_v50 = vpop.f32.mrf.mxu0 }
 0x128   :  { %v261_v53 = vpop.f32.mrf.mxu0 }
 0x129   :  { %v271_v54 = vpack.c.bf16 %v261_v53, %v259_v50 }
 0x12b   :  { %383 = vmatmul.bf16.gmra.mxu1 %v271_v54 }
 0x138   :  { %v349_v56 = vpop.f32.mrf.mxu1 }
 0x139   :  { %v350_v58 = vadd.f32 %v1181_v57, %v349_v56 }
 0x13b   :  { %v389_v61 = vmax.f32 %v350_v58, 0.0 }
 0x140   :  { %v351_v59 = vpop.f32.mrf.mxu1 }
 0x141   :  { %v352_v60 = vadd.f32 %v1181_v57, %v351_v59 }
 0x143   :  { %v390_v62 = vmax.f32 %v352_v60, 0.0 }
 0x145   :  { %v915_v63 = vpack.c.bf16 %v390_v62, %v389_v61 }
 0x147   :  { %916 = vst [vmem:[#allocation2 + $0x30] sm:$0xff] %v915_v63  }
 0x148   :  { %v354_v0 = vpop.f32.mrf.mxu1 }
 0x149   :  { %v355_v2 = vadd.f32 %v1181_v57, %v354_v0 }
 0x14b   :  { %v391_v5 = vmax.f32 %v355_v2, 0.0 }
 0x14e   :  { %v896_v1 = vld [vmem:[#allocation2 + $0x30] sm:$0xff] }
 0x14f   :  { %573 = vmatmul.bf16.vlgmr.msra.gmra.mxu2 %v896_v1 }
 0x150   :  { %v356_v3 = vpop.f32.mrf.mxu1 }
 0x151   :  { %v357_v4 = vadd.f32 %v1181_v57, %v356_v3 }
 0x153   :  { %v392_v6 = vmax.f32 %v357_v4, 0.0 }
 0x155   :  { %v920_v7 = vpack.c.bf16 %v392_v6, %v391_v5 }
 0x157   :  { %952 = vst [vmem:[#allocation2] sm:$0xff] %v920_v7  }
 0x158   :  { %v359_v13 = vpop.f32.mrf.mxu1 }
 0x159   :  { %v360_v16 = vadd.f32 %v1181_v57, %v359_v13 }
 0x15b   :  { %v393_v19 = vmax.f32 %v360_v16, 0.0 }
 0x15e   :  { %v897_v14 = vld [vmem:[#allocation2] sm:$0xff] }
 0x15f   :  { %578 = vmatmul.bf16.gmra.mxu2 %v897_v14 }
 0x160   :  { %v361_v17 = vpop.f32.mrf.mxu1 }
 0x161   :  { %v362_v18 = vadd.f32 %v1181_v57, %v361_v17 }
 0x163   :  { %v394_v21 = vmax.f32 %v362_v18, 0.0 }
 0x165   :  { %v925_v22 = vpack.c.bf16 %v394_v21, %v393_v19 }
 0x167   :  { %953 = vst [vmem:[#allocation2 + $0x18] sm:$0xff] %v925_v22  }
 0x168   :  { %v364_v24 = vpop.f32.mrf.mxu1 }
 0x169   :  { %v365_v26 = vadd.f32 %v1181_v57, %v364_v24 }
 0x16b   :  { %v395_v29 = vmax.f32 %v365_v26, 0.0 }
 0x16e   :  { %v898_v25 = vld [vmem:[#allocation2 + $0x18] sm:$0xff] }
 0x16f   :  { %583 = vmatmul.bf16.gmra.mxu2 %v898_v25 }
 0x170   :  { %v366_v27 = vpop.f32.mrf.mxu1 }
 0x171   :  { %v367_v28 = vadd.f32 %v1181_v57, %v366_v27 }
 0x173   :  { %v396_v30 = vmax.f32 %v367_v28, 0.0 }
 0x175   :  { %v930_v31 = vpack.c.bf16 %v396_v30, %v395_v29 }
 0x177   :  { %954 = vst [vmem:[#allocation2 + $0x10] sm:$0xff] %v930_v31  }
 0x178   :  { %v369_v32 = vpop.f32.mrf.mxu1 }
 0x179   :  { %v370_v34 = vadd.f32 %v1181_v57, %v369_v32 }
 0x17b   :  { %v397_v37 = vmax.f32 %v370_v34, 0.0 }
 0x17e   :  { %v899_v33 = vld [vmem:[#allocation2 + $0x10] sm:$0xff] }
 0x17f   :  { %588 = vmatmul.bf16.gmra.mxu2 %v899_v33  ;;  %v969_v33 = vld [vmem:[%s1218_s5] ss:$0 sm:$0xff]  ;;  %s1104_s5 = smov [#allocation11]  }
 0x180   :  { %v371_v35 = vpop.f32.mrf.mxu1  ;;  %s695_s18 = sshll.u32 %s1104_s5, 4  ;;  %s696_s18 = int_to_ptr.vmem [resolvable:$true] %s695_s18 }
 0x181   :  { %v372_v36 = vadd.f32 %v1181_v57, %v371_v35 }
 0x183   :  { %v398_v38 = vmax.f32 %v372_v36, 0.0 }
 0x185   :  { %v935_v39 = vpack.c.bf16 %v398_v38, %v397_v37 }
 0x187   :  { %955 = vst [vmem:[#allocation2 + $0x8] sm:$0xff] %v935_v39  }
 0x188   :  { %v374_v40 = vpop.f32.mrf.mxu1 }
 0x189   :  { %v375_v42 = vadd.f32 %v1181_v57, %v374_v40 }
 0x18b   :  { %v399_v45 = vmax.f32 %v375_v42, 0.0 }
 0x18e   :  { %v900_v41 = vld [vmem:[#allocation2 + $0x8] sm:$0xff] }
 0x18f   :  { %593 = vmatmul.bf16.gmra.mxu2 %v900_v41 }
 0x190   :  { %v376_v43 = vpop.f32.mrf.mxu1 }
 0x191   :  { %v377_v44 = vadd.f32 %v1181_v57, %v376_v43 }
 0x193   :  { %v400_v46 = vmax.f32 %v377_v44, 0.0 }
 0x195   :  { %v940_v47 = vpack.c.bf16 %v400_v46, %v399_v45 }
 0x197   :  { %956 = vst [vmem:[#allocation2 + $0x20] sm:$0xff] %v940_v47  }
 0x198   :  { %v379_v48 = vpop.f32.mrf.mxu1 }
 0x199   :  { %v380_v50 = vadd.f32 %v1181_v57, %v379_v48 }
 0x19b   :  { %v401_v53 = vmax.f32 %v380_v50, 0.0 }
 0x19e   :  { %v901_v49 = vld [vmem:[#allocation2 + $0x20] sm:$0xff] }
 0x19f   :  { %598 = vmatmul.bf16.gmra.mxu2 %v901_v49 }
 0x1a0   :  { %v381_v51 = vpop.f32.mrf.mxu1 }
 0x1a1   :  { %v382_v52 = vadd.f32 %v1181_v57, %v381_v51 }
 0x1a3   :  { %v402_v54 = vmax.f32 %v382_v52, 0.0 }
 0x1a5   :  { %v945_v55 = vpack.c.bf16 %v402_v54, %v401_v53 }
 0x1a7   :  { %957 = vst [vmem:[#allocation2 + $0x28] sm:$0xff] %v945_v55  }
 0x1a8   :  { %v384_v56 = vpop.f32.mrf.mxu1 }
 0x1a9   :  { %v385_v59 = vadd.f32 %v1181_v57, %v384_v56 }
 0x1ab   :  { %v403_v62 = vmax.f32 %v385_v59, 0.0 }
 0x1ae   :  { %v902_v58 = vld [vmem:[#allocation2 + $0x28] sm:$0xff] }
 0x1af   :  { %603 = vmatmul.bf16.gmra.mxu2 %v902_v58 }
 0x1b0   :  { %v386_v60 = vpop.f32.mrf.mxu1 }
 0x1b1   :  { %v387_v61 = vadd.f32 %v1181_v57, %v386_v60 }
 0x1b3   :  { %v404_v63 = vmax.f32 %v387_v61, 0.0 }
 0x1b5   :  { %v950_v0 = vpack.c.bf16 %v404_v63, %v403_v62 }
 0x1b7   :  { %958 = vst [vmem:[#allocation2 + $0x38] sm:$0xff] %v950_v0  }
 0x1be   :  { %v903_v1 = vld [vmem:[#allocation2 + $0x38] sm:$0xff] }
 0x1bf   :  { %608 = vmatmul.bf16.gmra.mxu2 %v903_v1 }
 0x1d2   :  { %v574_v2 = vpop.f32.mrf.mxu2 }
 0x1da   :  { %v576_v3 = vpop.f32.mrf.mxu2 }
 0x1db   :  { %v614_v4 = vpack.c.bf16 %v576_v3, %v574_v2 }
 0x1e2   :  { %v579_v5 = vpop.f32.mrf.mxu2 }
 0x1ea   :  { %v581_v6 = vpop.f32.mrf.mxu2 }
 0x1eb   :  { %v615_v7 = vpack.c.bf16 %v581_v6, %v579_v5 }
 0x1f2   :  { %v584_v13 = vpop.f32.mrf.mxu2 }
 0x1fa   :  { %v586_v14 = vpop.f32.mrf.mxu2 }
 0x1fb   :  { %v616_v16 = vpack.c.bf16 %v586_v14, %v584_v13 }
 0x202   :  { %v589_v17 = vpop.f32.mrf.mxu2 }
 0x20a   :  { %v591_v18 = vpop.f32.mrf.mxu2 }
 0x20b   :  { %v617_v19 = vpack.c.bf16 %v591_v18, %v589_v17 }
 0x212   :  { %v594_v21 = vpop.f32.mrf.mxu2 }
 0x21a   :  { %v596_v57 = vpop.f32.mrf.mxu2 }
 0x21b   :  { %v618_v32 = vpack.c.bf16 %v596_v57, %v594_v21 }
 0x222   :  { %v599_v22 = vpop.f32.mrf.mxu2 }
 0x22a   :  { %v601_v24 = vpop.f32.mrf.mxu2 }
 0x22b   :  { %v619_v31 = vpack.c.bf16 %v601_v24, %v599_v22 }
 0x232   :  { %v604_v25 = vpop.f32.mrf.mxu2 }
 0x23a   :  { %v606_v26 = vpop.f32.mrf.mxu2 }
 0x23b   :  { %v620_v30 = vpack.c.bf16 %v606_v26, %v604_v25 }
 0x242   :  { %v609_v27 = vpop.f32.mrf.mxu2 }
 0x24a   :  { %v611_v28 = vpop.f32.mrf.mxu2 }
 0x24b   :  { %v621_v29 = vpack.c.bf16 %v611_v28, %v609_v27 }
 0x24d   :  { %626 = vmatpush.bf16.msra.mxu3 %v621_v29 }
 0x251   :  { %627 = vmatpush.bf16.msra.mxu3 %v620_v30 }
 0x255   :  { %628 = vmatpush.bf16.msra.mxu3 %v619_v31 }
 0x259   :  { %629 = vmatpush.bf16.msra.mxu3 %v618_v32 }
 0x25d   :  { %630 = vmatpush.bf16.msra.mxu3 %v617_v19 }
 0x261   :  { %631 = vmatpush.bf16.msra.mxu3 %v616_v16 }
 0x265   :  { %632 = vmatpush.bf16.msra.mxu3 %v615_v7 }
 0x269   :  { %633 = vmatpush.bf16.msra.mxu3 %v614_v4 }
 0x26c   :  { %634 = vmatmul.bf16.vlgmr.msra.gmra.mxu3 %v1154_v8 }
 0x27c   :  { %639 = vmatmul.bf16.gmra.mxu3 %v1157_v9 }
 0x28c   :  { %644 = vmatmul.bf16.gmra.mxu3 %v1160_v10 }
 0x29c   :  { %649 = vmatmul.bf16.gmra.mxu3 %v1163_v11 }
 0x2ac   :  { %654 = vmatmul.bf16.gmra.mxu3 %v1166_v12 }
 0x2bc   :  { %659 = vmatmul.bf16.gmra.mxu3 %v1169_v15 }
 0x2cc   :  { %664 = vmatmul.bf16.gmra.mxu3 %v1172_v20 }
 0x2dc   :  { %669 = vmatmul.bf16.gmra.mxu3 %v1175_v23 }
 0x2ef   :  { %v635_v34 = vpop.f32.mrf.mxu3 }
 0x2f0   :  { %v636_v8 = vadd.f32 %v969_v33, %v635_v34 }
 0x2f2   :  { %675 = vst [vmem:[#allocation11] sm:$0xff] %v636_v8 }
 0x2f7   :  { %v637_v9 = vpop.f32.mrf.mxu3 }
 0x2f8   :  { %v638_v35 = vadd.f32 %v969_v33, %v637_v9 }
 0x2fa   :  { %676 = vst [vmem:[#allocation11 + $0x8] sm:$0xff] %v638_v35 }
 0x2ff   :  { %v640_v10 = vpop.f32.mrf.mxu3 }
 0x300   :  { %v641_v11 = vadd.f32 %v969_v33, %v640_v10 }
 0x302   :  { %677 = vst [vmem:[#allocation11 + $0x10] sm:$0xff] %v641_v11 }
 0x307   :  { %v642_v12 = vpop.f32.mrf.mxu3 }
 0x308   :  { %v643_v36 = vadd.f32 %v969_v33, %v642_v12 }
 0x30a   :  { %678 = vst [vmem:[#allocation11 + $0x18] sm:$0xff] %v643_v36 }
 0x30f   :  { %v645_v15 = vpop.f32.mrf.mxu3 }
 0x310   :  { %v646_v20 = vadd.f32 %v969_v33, %v645_v15 }
 0x312   :  { %679 = vst [vmem:[#allocation11 + $0x20] sm:$0xff] %v646_v20 }
 0x317   :  { %v647_v23 = vpop.f32.mrf.mxu3 }
 0x318   :  { %v648_v37 = vadd.f32 %v969_v33, %v647_v23 }
 0x31a   :  { %680 = vst [vmem:[#allocation11 + $0x28] sm:$0xff] %v648_v37 }
 0x31f   :  { %v650_v38 = vpop.f32.mrf.mxu3 }
 0x320   :  { %v651_v39 = vadd.f32 %v969_v33, %v650_v38 }
 0x322   :  { %681 = vst [vmem:[#allocation11 + $0x30] sm:$0xff] %v651_v39 }
 0x327   :  { %v652_v40 = vpop.f32.mrf.mxu3 }
 0x328   :  { %v653_v41 = vadd.f32 %v969_v33, %v652_v40 }
 0x32a   :  { %682 = vst [vmem:[#allocation11 + $0x38] sm:$0xff] %v653_v41 }
 0x32f   :  { %v655_v42 = vpop.f32.mrf.mxu3 }
 0x330   :  { %v656_v43 = vadd.f32 %v969_v33, %v655_v42 }
 0x332   :  { %683 = vst [vmem:[#allocation11 + $0x40] sm:$0xff] %v656_v43 }
 0x337   :  { %v657_v44 = vpop.f32.mrf.mxu3 }
 0x338   :  { %v658_v45 = vadd.f32 %v969_v33, %v657_v44 }
 0x33a   :  { %684 = vst [vmem:[#allocation11 + $0x48] sm:$0xff] %v658_v45 }
 0x33f   :  { %v660_v46 = vpop.f32.mrf.mxu3 }
 0x340   :  { %v661_v47 = vadd.f32 %v969_v33, %v660_v46 }
 0x342   :  { %685 = vst [vmem:[#allocation11 + $0x50] sm:$0xff] %v661_v47 }
 0x347   :  { %v662_v48 = vpop.f32.mrf.mxu3 }
 0x348   :  { %v663_v49 = vadd.f32 %v969_v33, %v662_v48 }
 0x34a   :  { %686 = vst [vmem:[#allocation11 + $0x58] sm:$0xff] %v663_v49 }
 0x34f   :  { %v665_v50 = vpop.f32.mrf.mxu3 }
 0x350   :  { %v666_v51 = vadd.f32 %v969_v33, %v665_v50 }
 0x352   :  { %687 = vst [vmem:[#allocation11 + $0x60] sm:$0xff] %v666_v51 }
 0x357   :  { %v667_v52 = vpop.f32.mrf.mxu3 }
 0x358   :  { %v668_v53 = vadd.f32 %v969_v33, %v667_v52 }
 0x35a   :  { %688 = vst [vmem:[#allocation11 + $0x68] sm:$0xff] %v668_v53 }
 0x35f   :  { %v670_v54 = vpop.f32.mrf.mxu3 }
 0x360   :  { %v671_v55 = vadd.f32 %v969_v33, %v670_v54 }
 0x362   :  { %689 = vst [vmem:[#allocation11 + $0x70] sm:$0xff] %v671_v55 }
 0x367   :  { %v672_v56 = vpop.f32.mrf.mxu3 }
 0x368   :  { %v673_v58 = vadd.f32 %v969_v33, %v672_v56 }
 0x36a   :  { %690 = vst [vmem:[#allocation11 + $0x78] sm:$0xff] %v673_v58 }
 0x36b   :  { %703 = dma.vmem_to_hbm [thread:$0]  %s696_s18, 2048, %s698_s21, [#allocation5], %s1105_s22, %s1105_s22, %s1106_s23  }
 0x36c   :  { %1096 = dma.done.wait [#allocation5], 2048  }
 0x36d   :  { %1097 = vsyncadd [#allocation5], 4294965248 }
 0x36e   :  { %708 = vsyncpa [#allocation4], 1 }
 0x36f   :  { %709 = vsyncpa [#allocation7], 1 }
 0x370   :  { %710 = vsyncpa [#allocation10], 1 }
 0x371   :  { %711 = vsyncpa [#allocation5], 1 }

</bundles_post_ra>
